<compile_context>
chip_gen: v5e
topology: v5e:2x2
jax: 0.10.0
libtpu: 0.0.40
codegen_flags: <defaults>
</compile_context>

<pallas_src>
import functools

import numpy as np
import jax
import jax.numpy as jnp
from jax import lax
from jax.experimental import pallas as pl
from jax.experimental.pallas import tpu as pltpu

LRELU_SLOPE = 0.1


def _erb_kernel(x_ref, masks_ref, ew_ref, fw_ref, rw_ref, bias_ref, feab_ref,
                o_ref, *, shifts, Ce):
    """One grid step = one image.

    x_ref    : (C, HW)        image; channels on sublanes, pixels on lanes
    masks_ref: (9, 1, HW)     f32 {0,1} tap-validity masks (static, shared)
    ew_ref   : (2, Ce, C)     bf16 expand 1x1 weights   (RRRB block 0 / 1)
    fw_ref   : (2, Ce, 9*Ce)  bf16 fea 3x3 weights, tap-major column blocks
    rw_ref   : (2, C, Ce)     bf16 reduce 1x1 weights
    bias_ref : (2, Ce + C, 1) f32  [expand bias ; reduce bias]
    feab_ref : (2, Ce, HW)    f32  fea bias + pad_tensor border contribution
    o_ref    : (C, HW)
    """
    _, HW = x_ref.shape
    x = x_ref[...].astype(jnp.float32)

    def rrrb(x_in, blk):
        b = bias_ref[blk]                      # (Ce + C, 1)
        eb = b[:Ce]                            # (Ce, 1) expand bias
        rb = b[Ce:]                            # (C, 1)  reduce bias

        # expand_conv (1x1); this is also the identity branch.
        e = jnp.dot(ew_ref[blk], x_in.astype(jnp.bfloat16),
                    preferred_element_type=jnp.float32) + eb          # (Ce, HW)

        # pad_tensor + fea_conv (3x3) as a single fused K = 9*Ce matmul: each
        # tap is a lane shift of e; out-of-image lanes are zeroed by the mask
        # and their pad-bias contribution is already baked into feab.  Rolls
        # only wrap inside this image, and every wrapped lane is masked.
        pieces = []
        for t, delta in enumerate(shifts):
            rolled = e if delta == 0 else pltpu.roll(e, shift=(-delta) % HW,
                                                     axis=1)
            pieces.append(rolled * masks_ref[t])                      # (Ce, HW)
        stacked = jnp.concatenate(pieces, axis=0).astype(jnp.bfloat16)

        f = jnp.dot(fw_ref[blk], stacked,
                    preferred_element_type=jnp.float32) + feab_ref[blk] + e

        # reduce_conv (1x1) + residual.
        return jnp.dot(rw_ref[blk], f.astype(jnp.bfloat16),
                       preferred_element_type=jnp.float32) + rb + x_in

    r1 = rrrb(x, 0)
    a = jnp.where(r1 > 0, r1, jnp.float32(LRELU_SLOPE) * r1)          # LeakyReLU
    o_ref[...] = rrrb(a, 1).astype(o_ref.dtype)


def erb_pallas(x, params):
    """x: (N, C, H, W).  params: the 12 ERB parameter arrays.

    Returns (N, C, H, W); same forward semantics as the PyTorch ERB (matmuls
    use bf16 operands with f32 accumulation on the MXU).
    """
    (ew1, eb1, fw1, fb1, rw1, rb1,
     ew2, eb2, fw2, fb2, rw2, rb2) = params
    N, C, H, W = x.shape
    Ce = ew1.shape[0]
    HW = H * W
    assert HW % 128 == 0, "H*W must be a multiple of the 128-lane width"

    # ---- static lane geometry: 3x3 tap shifts and validity masks ----
    hh = np.arange(HW, dtype=np.int64) // W
    ww = np.arange(HW, dtype=np.int64) % W
    shifts, mask_rows = [], []
    for dh in (-1, 0, 1):
        for dw in (-1, 0, 1):
            shifts.append(dh * W + dw)
            valid = ((hh + dh >= 0) & (hh + dh < H) &
                     (ww + dw >= 0) & (ww + dw < W))
            mask_rows.append(valid.astype(np.float32))
    masks_np = np.stack(mask_rows).reshape(9, 1, HW)
    masks = jnp.asarray(masks_np)

    # ---- parameter packing / pre-layout (tiny, layout plumbing only) ----
    def fea_taps(fw):
        # (Ce, Ce, 3, 3) -> (9, Ce, Ce), tap-major, t = kh*3 + kw
        return jnp.transpose(fw, (2, 3, 0, 1)).reshape(9, Ce, Ce)

    def fea_stacked(taps):
        # (9, Ce_out, Ce_in) -> (Ce_out, 9*Ce_in), tap-major column blocks
        return jnp.transpose(taps, (1, 0, 2)).reshape(Ce, 9 * Ce)

    def fea_bias_field(taps, eb, fb):
        # fb + sum_t (fw[t] @ eb) outer (1 - mask_t): pad_tensor's border
        # (out-of-image) contribution, computed once in full f32.
        w_eb = jnp.einsum('tij,j->ti', taps.astype(jnp.float32),
                          eb.astype(jnp.float32),
                          precision=lax.Precision.HIGHEST)            # (9, Ce)
        inv = jnp.asarray(1.0 - masks_np.reshape(9, HW))               # (9, HW)
        border = jnp.einsum('ti,tl->il', w_eb, inv,
                            precision=lax.Precision.HIGHEST)           # (Ce, HW)
        return fb.astype(jnp.float32)[:, None] + border

    taps1, taps2 = fea_taps(fw1), fea_taps(fw2)
    ew_pack = jnp.stack([ew1, ew2]).astype(jnp.bfloat16)               # (2,Ce,C)
    fw_pack = jnp.stack([fea_stacked(taps1),
                         fea_stacked(taps2)]).astype(jnp.bfloat16)     # (2,Ce,9Ce)
    rw_pack = jnp.stack([rw1, rw2]).astype(jnp.bfloat16)               # (2,C,Ce)
    bias_pack = jnp.stack(
        [jnp.concatenate([eb1, rb1]),
         jnp.concatenate([eb2, rb2])]).astype(jnp.float32)[..., None]  # (2,Ce+C,1)
    feab_pack = jnp.stack([fea_bias_field(taps1, eb1, fb1),
                           fea_bias_field(taps2, eb2, fb2)])           # (2,Ce,HW)

    x3 = x.reshape(N, C, HW)                                           # free

    kernel = functools.partial(_erb_kernel, shifts=tuple(shifts), Ce=Ce)

    def const_spec(a):
        nd = a.ndim
        return pl.BlockSpec(a.shape, lambda n, _nd=nd: (0,) * _nd)

    out = pl.pallas_call(
        kernel,
        grid=(N,),
        out_shape=jax.ShapeDtypeStruct((N, C, HW), x.dtype),
        in_specs=[
            pl.BlockSpec((None, C, HW), lambda n: (n, 0, 0)),          # x
            const_spec(masks),
            const_spec(ew_pack),
            const_spec(fw_pack),
            const_spec(rw_pack),
            const_spec(bias_pack),
            const_spec(feab_pack),
        ],
        out_specs=pl.BlockSpec((None, C, HW), lambda n: (n, 0, 0)),
        compiler_params=pltpu.CompilerParams(
            dimension_semantics=("parallel",)),
    )(x3, masks, ew_pack, fw_pack, rw_pack, bias_pack, feab_pack)

    return out.reshape(N, C, H, W)


if __name__ == "__main__":
    n_feats, ratio = 4, 2
    N, H, W = 2, 16, 16
    Ce = ratio * n_feats

    key = jax.random.PRNGKey(0)
    keys = jax.random.split(key, 13)

    x = jax.random.normal(keys[0], (N, n_feats, H, W), dtype=jnp.float32)

    def conv_init(kw_, kb_, cout, cin, k):
        fan_in = cin * k * k
        bound = 1.0 / (fan_in ** 0.5)
        w = jax.random.uniform(kw_, (cout, cin, k, k), minval=-bound,
                               maxval=bound, dtype=jnp.float32)
        b = jax.random.uniform(kb_, (cout,), minval=-bound, maxval=bound,
                               dtype=jnp.float32)
        return w, b

    ew1_4d, eb1 = conv_init(keys[1], keys[2], Ce, n_feats, 1)
    fw1, fb1 = conv_init(keys[3], keys[4], Ce, Ce, 3)
    rw1_4d, rb1 = conv_init(keys[5], keys[6], n_feats, Ce, 1)
    ew2_4d, eb2 = conv_init(keys[7], keys[8], Ce, n_feats, 1)
    fw2, fb2 = conv_init(keys[9], keys[10], Ce, Ce, 3)
    rw2_4d, rb2 = conv_init(keys[11], keys[12], n_feats, Ce, 1)

    params = (ew1_4d[:, :, 0, 0], eb1, fw1, fb1, rw1_4d[:, :, 0, 0], rb1,
              ew2_4d[:, :, 0, 0], eb2, fw2, fb2, rw2_4d[:, :, 0, 0], rb2)

    out = jax.jit(erb_pallas)(x, params)
    out = jax.block_until_ready(out)

    # ---- Reference: PyTorch ERB forward replicated with f32 XLA convs ----
    def conv(x_, w_, b_):
        y = lax.conv_general_dilated(
            x_, w_, window_strides=(1, 1), padding="VALID",
            dimension_numbers=("NCHW", "OIHW", "NCHW"),
            precision=lax.Precision.HIGHEST)
        return y + b_.reshape(1, -1, 1, 1)

    def pad_tensor_ref(t, pattern):
        patt = pattern.reshape(1, -1, 1, 1)
        t = jnp.pad(t, ((0, 0), (0, 0), (1, 1), (1, 1)))
        t = t.at[:, :, 0:1, :].set(patt)
        t = t.at[:, :, -1:, :].set(patt)
        t = t.at[:, :, :, 0:1].set(patt)
        t = t.at[:, :, :, -1:].set(patt)
        return t

    def rrrb_ref(x_, ew4, eb, fw, fb, rw4, rb):
        e = conv(x_, ew4, eb)
        p = pad_tensor_ref(e, eb)
        f = conv(p, fw, fb) + e
        return conv(f, rw4, rb) + x_

    r1 = rrrb_ref(x, ew1_4d, eb1, fw1, fb1, rw1_4d, rb1)
    a = jnp.where(r1 > 0, r1, LRELU_SLOPE * r1)
    ref = rrrb_ref(a, ew2_4d, eb2, fw2, fb2, rw2_4d, rb2)

    max_diff = float(jnp.max(jnp.abs(out - ref)))
    assert out.shape == (N, n_feats, H, W)
    # Kernel runs matmuls with bf16 operands / f32 accumulation (per the perf
    # review); reference is f32 HIGHEST precision, so tolerance is set to the
    # expected bf16 rounding level.
    assert jnp.allclose(out, ref, atol=5e-2, rtol=5e-2), (
        "max abs diff = %e" % max_diff)

    print("KERNEL_OK")
</pallas_src>

<mosaic_0001>
module attributes {stable_mosaic.version = 11 : i64} {
  func.func @_erb_kernel(%arg0: i32, %arg1: memref<1x4x256xf32, #tpu.memory_space<vmem>>, %arg2: memref<9x1x256xf32, #tpu.memory_space<vmem>>, %arg3: memref<2x8x4xbf16, #tpu.memory_space<vmem>>, %arg4: memref<2x8x72xbf16, #tpu.memory_space<vmem>>, %arg5: memref<2x4x8xbf16, #tpu.memory_space<vmem>>, %arg6: memref<2x12x1xf32, #tpu.memory_space<vmem>>, %arg7: memref<2x8x256xf32, #tpu.memory_space<vmem>>, %arg8: memref<1x4x256xf32, #tpu.memory_space<vmem>>) attributes {dimension_semantics = [#tpu.dimension_semantics<parallel>], iteration_bounds = array<i64: 2>, scalar_prefetch = 0 : i64, scratch_operands = 0 : i64, tpu.core_type = #tpu.core_type<tc>, window_params = [{transform_indices = @transform_0, window_bounds = array<i64: 1, 4, 256>}, {pipeline_mode = #tpu.pipeline_mode<synchronous>, transform_indices = @transform_1, window_bounds = array<i64: 9, 1, 256>}, {pipeline_mode = #tpu.pipeline_mode<synchronous>, transform_indices = @transform_2, window_bounds = array<i64: 2, 8, 4>}, {pipeline_mode = #tpu.pipeline_mode<synchronous>, transform_indices = @transform_3, window_bounds = array<i64: 2, 8, 72>}, {pipeline_mode = #tpu.pipeline_mode<synchronous>, transform_indices = @transform_4, window_bounds = array<i64: 2, 4, 8>}, {pipeline_mode = #tpu.pipeline_mode<synchronous>, transform_indices = @transform_5, window_bounds = array<i64: 2, 12, 1>}, {pipeline_mode = #tpu.pipeline_mode<synchronous>, transform_indices = @transform_6, window_bounds = array<i64: 2, 8, 256>}, {transform_indices = @transform_7, window_bounds = array<i64: 1, 4, 256>}]} {
    %c0 = arith.constant 0 : index
    %c0_0 = arith.constant 0 : index
    %c0_1 = arith.constant 0 : index
    %0 = vector.load %arg1[%c0, %c0_0, %c0_1] : memref<1x4x256xf32, #tpu.memory_space<vmem>>, vector<1x4x256xf32>
    %1 = vector.shape_cast %0 : vector<1x4x256xf32> to vector<4x256xf32>
    %c0_2 = arith.constant 0 : index
    %c0_3 = arith.constant 0 : index
    %c0_4 = arith.constant 0 : index
    %2 = vector.load %arg6[%c0_2, %c0_3, %c0_4] : memref<2x12x1xf32, #tpu.memory_space<vmem>>, vector<1x12x1xf32>
    %3 = vector.shape_cast %2 : vector<1x12x1xf32> to vector<12x1xf32>
    %4 = vector.extract_strided_slice %3 {offsets = [0, 0], sizes = [8, 1], strides = [1, 1]} : vector<12x1xf32> to vector<8x1xf32>
    %5 = vector.extract_strided_slice %3 {offsets = [8, 0], sizes = [4, 1], strides = [1, 1]} : vector<12x1xf32> to vector<4x1xf32>
    %c0_5 = arith.constant 0 : index
    %c0_6 = arith.constant 0 : index
    %c0_7 = arith.constant 0 : index
    %6 = vector.load %arg3[%c0_5, %c0_6, %c0_7] : memref<2x8x4xbf16, #tpu.memory_space<vmem>>, vector<1x8x4xbf16>
    %7 = vector.shape_cast %6 : vector<1x8x4xbf16> to vector<8x4xbf16>
    %8 = arith.truncf %1 : vector<4x256xf32> to vector<4x256xbf16>
    %cst = arith.constant dense<0.000000e+00> : vector<8x256xf32>
    %9 = tpu.matmul %7, %8, %cst {dimension_numbers = #tpu.dot_dimension_numbers<[1], [0], [0], [1], [0, 0, 1, 1], [], []>} : vector<8x4xbf16>, vector<4x256xbf16>, vector<8x256xf32> -> vector<8x256xf32>
    %10 = vector.broadcast %4 : vector<8x1xf32> to vector<8x256xf32>
    %11 = arith.addf %9, %10 : vector<8x256xf32>
    %c17_i32 = arith.constant 17 : i32
    %12 = tpu.dynamic_rotate %11 by %c17_i32 dim 1 : vector<8x256xf32>, i32 -> vector<8x256xf32>
    %c0_8 = arith.constant 0 : index
    %c0_9 = arith.constant 0 : index
    %c0_10 = arith.constant 0 : index
    %13 = vector.load %arg2[%c0_8, %c0_9, %c0_10] : memref<9x1x256xf32, #tpu.memory_space<vmem>>, vector<1x1x256xf32>
    %14 = vector.shape_cast %13 : vector<1x1x256xf32> to vector<1x256xf32>
    %15 = vector.broadcast %14 : vector<1x256xf32> to vector<8x256xf32>
    %16 = arith.mulf %12, %15 : vector<8x256xf32>
    %c16_i32 = arith.constant 16 : i32
    %17 = tpu.dynamic_rotate %11 by %c16_i32 dim 1 : vector<8x256xf32>, i32 -> vector<8x256xf32>
    %c1 = arith.constant 1 : index
    %c0_11 = arith.constant 0 : index
    %c0_12 = arith.constant 0 : index
    %18 = vector.load %arg2[%c1, %c0_11, %c0_12] : memref<9x1x256xf32, #tpu.memory_space<vmem>>, vector<1x1x256xf32>
    %19 = vector.shape_cast %18 : vector<1x1x256xf32> to vector<1x256xf32>
    %20 = vector.broadcast %19 : vector<1x256xf32> to vector<8x256xf32>
    %21 = arith.mulf %17, %20 : vector<8x256xf32>
    %c15_i32 = arith.constant 15 : i32
    %22 = tpu.dynamic_rotate %11 by %c15_i32 dim 1 : vector<8x256xf32>, i32 -> vector<8x256xf32>
    %c2 = arith.constant 2 : index
    %c0_13 = arith.constant 0 : index
    %c0_14 = arith.constant 0 : index
    %23 = vector.load %arg2[%c2, %c0_13, %c0_14] : memref<9x1x256xf32, #tpu.memory_space<vmem>>, vector<1x1x256xf32>
    %24 = vector.shape_cast %23 : vector<1x1x256xf32> to vector<1x256xf32>
    %25 = vector.broadcast %24 : vector<1x256xf32> to vector<8x256xf32>
    %26 = arith.mulf %22, %25 : vector<8x256xf32>
    %c1_i32 = arith.constant 1 : i32
    %27 = tpu.dynamic_rotate %11 by %c1_i32 dim 1 : vector<8x256xf32>, i32 -> vector<8x256xf32>
    %c3 = arith.constant 3 : index
    %c0_15 = arith.constant 0 : index
    %c0_16 = arith.constant 0 : index
    %28 = vector.load %arg2[%c3, %c0_15, %c0_16] : memref<9x1x256xf32, #tpu.memory_space<vmem>>, vector<1x1x256xf32>
    %29 = vector.shape_cast %28 : vector<1x1x256xf32> to vector<1x256xf32>
    %30 = vector.broadcast %29 : vector<1x256xf32> to vector<8x256xf32>
    %31 = arith.mulf %27, %30 : vector<8x256xf32>
    %c4 = arith.constant 4 : index
    %c0_17 = arith.constant 0 : index
    %c0_18 = arith.constant 0 : index
    %32 = vector.load %arg2[%c4, %c0_17, %c0_18] : memref<9x1x256xf32, #tpu.memory_space<vmem>>, vector<1x1x256xf32>
    %33 = vector.shape_cast %32 : vector<1x1x256xf32> to vector<1x256xf32>
    %34 = vector.broadcast %33 : vector<1x256xf32> to vector<8x256xf32>
    %35 = arith.mulf %11, %34 : vector<8x256xf32>
    %c255_i32 = arith.constant 255 : i32
    %36 = tpu.dynamic_rotate %11 by %c255_i32 dim 1 : vector<8x256xf32>, i32 -> vector<8x256xf32>
    %c5 = arith.constant 5 : index
    %c0_19 = arith.constant 0 : index
    %c0_20 = arith.constant 0 : index
    %37 = vector.load %arg2[%c5, %c0_19, %c0_20] : memref<9x1x256xf32, #tpu.memory_space<vmem>>, vector<1x1x256xf32>
    %38 = vector.shape_cast %37 : vector<1x1x256xf32> to vector<1x256xf32>
    %39 = vector.broadcast %38 : vector<1x256xf32> to vector<8x256xf32>
    %40 = arith.mulf %36, %39 : vector<8x256xf32>
    %c241_i32 = arith.constant 241 : i32
    %41 = tpu.dynamic_rotate %11 by %c241_i32 dim 1 : vector<8x256xf32>, i32 -> vector<8x256xf32>
    %c6 = arith.constant 6 : index
    %c0_21 = arith.constant 0 : index
    %c0_22 = arith.constant 0 : index
    %42 = vector.load %arg2[%c6, %c0_21, %c0_22] : memref<9x1x256xf32, #tpu.memory_space<vmem>>, vector<1x1x256xf32>
    %43 = vector.shape_cast %42 : vector<1x1x256xf32> to vector<1x256xf32>
    %44 = vector.broadcast %43 : vector<1x256xf32> to vector<8x256xf32>
    %45 = arith.mulf %41, %44 : vector<8x256xf32>
    %c240_i32 = arith.constant 240 : i32
    %46 = tpu.dynamic_rotate %11 by %c240_i32 dim 1 : vector<8x256xf32>, i32 -> vector<8x256xf32>
    %c7 = arith.constant 7 : index
    %c0_23 = arith.constant 0 : index
    %c0_24 = arith.constant 0 : index
    %47 = vector.load %arg2[%c7, %c0_23, %c0_24] : memref<9x1x256xf32, #tpu.memory_space<vmem>>, vector<1x1x256xf32>
    %48 = vector.shape_cast %47 : vector<1x1x256xf32> to vector<1x256xf32>
    %49 = vector.broadcast %48 : vector<1x256xf32> to vector<8x256xf32>
    %50 = arith.mulf %46, %49 : vector<8x256xf32>
    %c239_i32 = arith.constant 239 : i32
    %51 = tpu.dynamic_rotate %11 by %c239_i32 dim 1 : vector<8x256xf32>, i32 -> vector<8x256xf32>
    %c8 = arith.constant 8 : index
    %c0_25 = arith.constant 0 : index
    %c0_26 = arith.constant 0 : index
    %52 = vector.load %arg2[%c8, %c0_25, %c0_26] : memref<9x1x256xf32, #tpu.memory_space<vmem>>, vector<1x1x256xf32>
    %53 = vector.shape_cast %52 : vector<1x1x256xf32> to vector<1x256xf32>
    %54 = vector.broadcast %53 : vector<1x256xf32> to vector<8x256xf32>
    %55 = arith.mulf %51, %54 : vector<8x256xf32>
    %56 = tpu.concatenate %16, %21, %26, %31, %35, %40, %45, %50, %55 in 0 : vector<8x256xf32>, vector<8x256xf32>, vector<8x256xf32>, vector<8x256xf32>, vector<8x256xf32>, vector<8x256xf32>, vector<8x256xf32>, vector<8x256xf32>, vector<8x256xf32> -> vector<72x256xf32>
    %57 = arith.truncf %56 : vector<72x256xf32> to vector<72x256xbf16>
    %c0_27 = arith.constant 0 : index
    %c0_28 = arith.constant 0 : index
    %c0_29 = arith.constant 0 : index
    %58 = vector.load %arg4[%c0_27, %c0_28, %c0_29] : memref<2x8x72xbf16, #tpu.memory_space<vmem>>, vector<1x8x72xbf16>
    %59 = vector.shape_cast %58 : vector<1x8x72xbf16> to vector<8x72xbf16>
    %cst_30 = arith.constant dense<0.000000e+00> : vector<8x256xf32>
    %60 = tpu.matmul %59, %57, %cst_30 {dimension_numbers = #tpu.dot_dimension_numbers<[1], [0], [0], [1], [0, 0, 1, 1], [], []>} : vector<8x72xbf16>, vector<72x256xbf16>, vector<8x256xf32> -> vector<8x256xf32>
    %c0_31 = arith.constant 0 : index
    %c0_32 = arith.constant 0 : index
    %c0_33 = arith.constant 0 : index
    %61 = vector.load %arg7[%c0_31, %c0_32, %c0_33] : memref<2x8x256xf32, #tpu.memory_space<vmem>>, vector<1x8x256xf32>
    %62 = vector.shape_cast %61 : vector<1x8x256xf32> to vector<8x256xf32>
    %63 = arith.addf %60, %62 : vector<8x256xf32>
    %64 = arith.addf %63, %11 : vector<8x256xf32>
    %c0_34 = arith.constant 0 : index
    %c0_35 = arith.constant 0 : index
    %c0_36 = arith.constant 0 : index
    %65 = vector.load %arg5[%c0_34, %c0_35, %c0_36] : memref<2x4x8xbf16, #tpu.memory_space<vmem>>, vector<1x4x8xbf16>
    %66 = vector.shape_cast %65 : vector<1x4x8xbf16> to vector<4x8xbf16>
    %67 = arith.truncf %64 : vector<8x256xf32> to vector<8x256xbf16>
    %cst_37 = arith.constant dense<0.000000e+00> : vector<4x256xf32>
    %68 = tpu.matmul %66, %67, %cst_37 {dimension_numbers = #tpu.dot_dimension_numbers<[1], [0], [0], [1], [0, 0, 1, 1], [], []>} : vector<4x8xbf16>, vector<8x256xbf16>, vector<4x256xf32> -> vector<4x256xf32>
    %69 = vector.broadcast %5 : vector<4x1xf32> to vector<4x256xf32>
    %70 = arith.addf %68, %69 : vector<4x256xf32>
    %71 = arith.addf %70, %1 : vector<4x256xf32>
    %cst_38 = arith.constant 0.000000e+00 : f32
    %72 = vector.broadcast %cst_38 : f32 to vector<4x256xf32>
    %73 = arith.cmpf ogt, %71, %72 : vector<4x256xf32>
    %cst_39 = arith.constant 1.000000e-01 : f32
    %74 = vector.broadcast %cst_39 : f32 to vector<4x256xf32>
    %75 = arith.mulf %74, %71 : vector<4x256xf32>
    %76 = arith.select %73, %71, %75 : vector<4x256xi1>, vector<4x256xf32>
    %c1_40 = arith.constant 1 : index
    %c0_41 = arith.constant 0 : index
    %c0_42 = arith.constant 0 : index
    %77 = vector.load %arg6[%c1_40, %c0_41, %c0_42] : memref<2x12x1xf32, #tpu.memory_space<vmem>>, vector<1x12x1xf32>
    %78 = vector.shape_cast %77 : vector<1x12x1xf32> to vector<12x1xf32>
    %79 = vector.extract_strided_slice %78 {offsets = [0, 0], sizes = [8, 1], strides = [1, 1]} : vector<12x1xf32> to vector<8x1xf32>
    %80 = vector.extract_strided_slice %78 {offsets = [8, 0], sizes = [4, 1], strides = [1, 1]} : vector<12x1xf32> to vector<4x1xf32>
    %c1_43 = arith.constant 1 : index
    %c0_44 = arith.constant 0 : index
    %c0_45 = arith.constant 0 : index
    %81 = vector.load %arg3[%c1_43, %c0_44, %c0_45] : memref<2x8x4xbf16, #tpu.memory_space<vmem>>, vector<1x8x4xbf16>
    %82 = vector.shape_cast %81 : vector<1x8x4xbf16> to vector<8x4xbf16>
    %83 = arith.truncf %76 : vector<4x256xf32> to vector<4x256xbf16>
    %cst_46 = arith.constant dense<0.000000e+00> : vector<8x256xf32>
    %84 = tpu.matmul %82, %83, %cst_46 {dimension_numbers = #tpu.dot_dimension_numbers<[1], [0], [0], [1], [0, 0, 1, 1], [], []>} : vector<8x4xbf16>, vector<4x256xbf16>, vector<8x256xf32> -> vector<8x256xf32>
    %85 = vector.broadcast %79 : vector<8x1xf32> to vector<8x256xf32>
    %86 = arith.addf %84, %85 : vector<8x256xf32>
    %c17_i32_47 = arith.constant 17 : i32
    %87 = tpu.dynamic_rotate %86 by %c17_i32_47 dim 1 : vector<8x256xf32>, i32 -> vector<8x256xf32>
    %c0_48 = arith.constant 0 : index
    %c0_49 = arith.constant 0 : index
    %c0_50 = arith.constant 0 : index
    %88 = vector.load %arg2[%c0_48, %c0_49, %c0_50] : memref<9x1x256xf32, #tpu.memory_space<vmem>>, vector<1x1x256xf32>
    %89 = vector.shape_cast %88 : vector<1x1x256xf32> to vector<1x256xf32>
    %90 = vector.broadcast %89 : vector<1x256xf32> to vector<8x256xf32>
    %91 = arith.mulf %87, %90 : vector<8x256xf32>
    %c16_i32_51 = arith.constant 16 : i32
    %92 = tpu.dynamic_rotate %86 by %c16_i32_51 dim 1 : vector<8x256xf32>, i32 -> vector<8x256xf32>
    %c1_52 = arith.constant 1 : index
    %c0_53 = arith.constant 0 : index
    %c0_54 = arith.constant 0 : index
    %93 = vector.load %arg2[%c1_52, %c0_53, %c0_54] : memref<9x1x256xf32, #tpu.memory_space<vmem>>, vector<1x1x256xf32>
    %94 = vector.shape_cast %93 : vector<1x1x256xf32> to vector<1x256xf32>
    %95 = vector.broadcast %94 : vector<1x256xf32> to vector<8x256xf32>
    %96 = arith.mulf %92, %95 : vector<8x256xf32>
    %c15_i32_55 = arith.constant 15 : i32
    %97 = tpu.dynamic_rotate %86 by %c15_i32_55 dim 1 : vector<8x256xf32>, i32 -> vector<8x256xf32>
    %c2_56 = arith.constant 2 : index
    %c0_57 = arith.constant 0 : index
    %c0_58 = arith.constant 0 : index
    %98 = vector.load %arg2[%c2_56, %c0_57, %c0_58] : memref<9x1x256xf32, #tpu.memory_space<vmem>>, vector<1x1x256xf32>
    %99 = vector.shape_cast %98 : vector<1x1x256xf32> to vector<1x256xf32>
    %100 = vector.broadcast %99 : vector<1x256xf32> to vector<8x256xf32>
    %101 = arith.mulf %97, %100 : vector<8x256xf32>
    %c1_i32_59 = arith.constant 1 : i32
    %102 = tpu.dynamic_rotate %86 by %c1_i32_59 dim 1 : vector<8x256xf32>, i32 -> vector<8x256xf32>
    %c3_60 = arith.constant 3 : index
    %c0_61 = arith.constant 0 : index
    %c0_62 = arith.constant 0 : index
    %103 = vector.load %arg2[%c3_60, %c0_61, %c0_62] : memref<9x1x256xf32, #tpu.memory_space<vmem>>, vector<1x1x256xf32>
    %104 = vector.shape_cast %103 : vector<1x1x256xf32> to vector<1x256xf32>
    %105 = vector.broadcast %104 : vector<1x256xf32> to vector<8x256xf32>
    %106 = arith.mulf %102, %105 : vector<8x256xf32>
    %c4_63 = arith.constant 4 : index
    %c0_64 = arith.constant 0 : index
    %c0_65 = arith.constant 0 : index
    %107 = vector.load %arg2[%c4_63, %c0_64, %c0_65] : memref<9x1x256xf32, #tpu.memory_space<vmem>>, vector<1x1x256xf32>
    %108 = vector.shape_cast %107 : vector<1x1x256xf32> to vector<1x256xf32>
    %109 = vector.broadcast %108 : vector<1x256xf32> to vector<8x256xf32>
    %110 = arith.mulf %86, %109 : vector<8x256xf32>
    %c255_i32_66 = arith.constant 255 : i32
    %111 = tpu.dynamic_rotate %86 by %c255_i32_66 dim 1 : vector<8x256xf32>, i32 -> vector<8x256xf32>
    %c5_67 = arith.constant 5 : index
    %c0_68 = arith.constant 0 : index
    %c0_69 = arith.constant 0 : index
    %112 = vector.load %arg2[%c5_67, %c0_68, %c0_69] : memref<9x1x256xf32, #tpu.memory_space<vmem>>, vector<1x1x256xf32>
    %113 = vector.shape_cast %112 : vector<1x1x256xf32> to vector<1x256xf32>
    %114 = vector.broadcast %113 : vector<1x256xf32> to vector<8x256xf32>
    %115 = arith.mulf %111, %114 : vector<8x256xf32>
    %c241_i32_70 = arith.constant 241 : i32
    %116 = tpu.dynamic_rotate %86 by %c241_i32_70 dim 1 : vector<8x256xf32>, i32 -> vector<8x256xf32>
    %c6_71 = arith.constant 6 : index
    %c0_72 = arith.constant 0 : index
    %c0_73 = arith.constant 0 : index
    %117 = vector.load %arg2[%c6_71, %c0_72, %c0_73] : memref<9x1x256xf32, #tpu.memory_space<vmem>>, vector<1x1x256xf32>
    %118 = vector.shape_cast %117 : vector<1x1x256xf32> to vector<1x256xf32>
    %119 = vector.broadcast %118 : vector<1x256xf32> to vector<8x256xf32>
    %120 = arith.mulf %116, %119 : vector<8x256xf32>
    %c240_i32_74 = arith.constant 240 : i32
    %121 = tpu.dynamic_rotate %86 by %c240_i32_74 dim 1 : vector<8x256xf32>, i32 -> vector<8x256xf32>
    %c7_75 = arith.constant 7 : index
    %c0_76 = arith.constant 0 : index
    %c0_77 = arith.constant 0 : index
    %122 = vector.load %arg2[%c7_75, %c0_76, %c0_77] : memref<9x1x256xf32, #tpu.memory_space<vmem>>, vector<1x1x256xf32>
    %123 = vector.shape_cast %122 : vector<1x1x256xf32> to vector<1x256xf32>
    %124 = vector.broadcast %123 : vector<1x256xf32> to vector<8x256xf32>
    %125 = arith.mulf %121, %124 : vector<8x256xf32>
    %c239_i32_78 = arith.constant 239 : i32
    %126 = tpu.dynamic_rotate %86 by %c239_i32_78 dim 1 : vector<8x256xf32>, i32 -> vector<8x256xf32>
    %c8_79 = arith.constant 8 : index
    %c0_80 = arith.constant 0 : index
    %c0_81 = arith.constant 0 : index
    %127 = vector.load %arg2[%c8_79, %c0_80, %c0_81] : memref<9x1x256xf32, #tpu.memory_space<vmem>>, vector<1x1x256xf32>
    %128 = vector.shape_cast %127 : vector<1x1x256xf32> to vector<1x256xf32>
    %129 = vector.broadcast %128 : vector<1x256xf32> to vector<8x256xf32>
    %130 = arith.mulf %126, %129 : vector<8x256xf32>
    %131 = tpu.concatenate %91, %96, %101, %106, %110, %115, %120, %125, %130 in 0 : vector<8x256xf32>, vector<8x256xf32>, vector<8x256xf32>, vector<8x256xf32>, vector<8x256xf32>, vector<8x256xf32>, vector<8x256xf32>, vector<8x256xf32>, vector<8x256xf32> -> vector<72x256xf32>
    %132 = arith.truncf %131 : vector<72x256xf32> to vector<72x256xbf16>
    %c1_82 = arith.constant 1 : index
    %c0_83 = arith.constant 0 : index
    %c0_84 = arith.constant 0 : index
    %133 = vector.load %arg4[%c1_82, %c0_83, %c0_84] : memref<2x8x72xbf16, #tpu.memory_space<vmem>>, vector<1x8x72xbf16>
    %134 = vector.shape_cast %133 : vector<1x8x72xbf16> to vector<8x72xbf16>
    %cst_85 = arith.constant dense<0.000000e+00> : vector<8x256xf32>
    %135 = tpu.matmul %134, %132, %cst_85 {dimension_numbers = #tpu.dot_dimension_numbers<[1], [0], [0], [1], [0, 0, 1, 1], [], []>} : vector<8x72xbf16>, vector<72x256xbf16>, vector<8x256xf32> -> vector<8x256xf32>
    %c1_86 = arith.constant 1 : index
    %c0_87 = arith.constant 0 : index
    %c0_88 = arith.constant 0 : index
    %136 = vector.load %arg7[%c1_86, %c0_87, %c0_88] : memref<2x8x256xf32, #tpu.memory_space<vmem>>, vector<1x8x256xf32>
    %137 = vector.shape_cast %136 : vector<1x8x256xf32> to vector<8x256xf32>
    %138 = arith.addf %135, %137 : vector<8x256xf32>
    %139 = arith.addf %138, %86 : vector<8x256xf32>
    %c1_89 = arith.constant 1 : index
    %c0_90 = arith.constant 0 : index
    %c0_91 = arith.constant 0 : index
    %140 = vector.load %arg5[%c1_89, %c0_90, %c0_91] : memref<2x4x8xbf16, #tpu.memory_space<vmem>>, vector<1x4x8xbf16>
    %141 = vector.shape_cast %140 : vector<1x4x8xbf16> to vector<4x8xbf16>
    %142 = arith.truncf %139 : vector<8x256xf32> to vector<8x256xbf16>
    %cst_92 = arith.constant dense<0.000000e+00> : vector<4x256xf32>
    %143 = tpu.matmul %141, %142, %cst_92 {dimension_numbers = #tpu.dot_dimension_numbers<[1], [0], [0], [1], [0, 0, 1, 1], [], []>} : vector<4x8xbf16>, vector<8x256xbf16>, vector<4x256xf32> -> vector<4x256xf32>
    %144 = vector.broadcast %80 : vector<4x1xf32> to vector<4x256xf32>
    %145 = arith.addf %143, %144 : vector<4x256xf32>
    %146 = arith.addf %145, %76 : vector<4x256xf32>
    %c0_93 = arith.constant 0 : index
    %c0_94 = arith.constant 0 : index
    %c0_95 = arith.constant 0 : index
    %147 = vector.load %arg8[%c0_93, %c0_94, %c0_95] : memref<1x4x256xf32, #tpu.memory_space<vmem>>, vector<1x4x256xf32>
    %148 = vector.shape_cast %147 : vector<1x4x256xf32> to vector<4x256xf32>
    %149 = vector.shape_cast %146 : vector<4x256xf32> to vector<1x4x256xf32>
    tpu.vector_store %arg8[%c0_93, %c0_94, %c0_95], %149 {strides = array<i32>} : memref<1x4x256xf32, #tpu.memory_space<vmem>>, vector<1x4x256xf32>,
    return
  }
  func.func @transform_0(%arg0: i32) -> (i32, i32, i32) {
    %c0_i32 = arith.constant 0 : i32
    %c0_i32_0 = arith.constant 0 : i32
    %c0_i32_1 = arith.constant 0 : i32
    return %arg0, %c0_i32, %c0_i32_0 : i32, i32, i32
  }
  func.func @transform_1(%arg0: i32) -> (i32, i32, i32) {
    %c0_i32 = arith.constant 0 : i32
    %c0_i32_0 = arith.constant 0 : i32
    %c0_i32_1 = arith.constant 0 : i32
    %c0_i32_2 = arith.constant 0 : i32
    return %c0_i32, %c0_i32_0, %c0_i32_1 : i32, i32, i32
  }
  func.func @transform_2(%arg0: i32) -> (i32, i32, i32) {
    %c0_i32 = arith.constant 0 : i32
    %c0_i32_0 = arith.constant 0 : i32
    %c0_i32_1 = arith.constant 0 : i32
    %c0_i32_2 = arith.constant 0 : i32
    return %c0_i32, %c0_i32_0, %c0_i32_1 : i32, i32, i32
  }
  func.func @transform_3(%arg0: i32) -> (i32, i32, i32) {
    %c0_i32 = arith.constant 0 : i32
    %c0_i32_0 = arith.constant 0 : i32
    %c0_i32_1 = arith.constant 0 : i32
    %c0_i32_2 = arith.constant 0 : i32
    return %c0_i32, %c0_i32_0, %c0_i32_1 : i32, i32, i32
  }
  func.func @transform_4(%arg0: i32) -> (i32, i32, i32) {
    %c0_i32 = arith.constant 0 : i32
    %c0_i32_0 = arith.constant 0 : i32
    %c0_i32_1 = arith.constant 0 : i32
    %c0_i32_2 = arith.constant 0 : i32
    return %c0_i32, %c0_i32_0, %c0_i32_1 : i32, i32, i32
  }
  func.func @transform_5(%arg0: i32) -> (i32, i32, i32) {
    %c0_i32 = arith.constant 0 : i32
    %c0_i32_0 = arith.constant 0 : i32
    %c0_i32_1 = arith.constant 0 : i32
    %c0_i32_2 = arith.constant 0 : i32
    return %c0_i32, %c0_i32_0, %c0_i32_1 : i32, i32, i32
  }
  func.func @transform_6(%arg0: i32) -> (i32, i32, i32) {
    %c0_i32 = arith.constant 0 : i32
    %c0_i32_0 = arith.constant 0 : i32
    %c0_i32_1 = arith.constant 0 : i32
    %c0_i32_2 = arith.constant 0 : i32
    return %c0_i32, %c0_i32_0, %c0_i32_1 : i32, i32, i32
  }
  func.func @transform_7(%arg0: i32) -> (i32, i32, i32) {
    %c0_i32 = arith.constant 0 : i32
    %c0_i32_0 = arith.constant 0 : i32
    %c0_i32_1 = arith.constant 0 : i32
    return %arg0, %c0_i32, %c0_i32_0 : i32, i32, i32
  }
}

</mosaic_0001>

<bundles_post_ra>
// kernel: erb_pallas.1
= control target key start
LH: loop header
LB: loop body
LE: loop exit
PB: predicated region body
PF: predicated region fallthrough
CT: control target
= control target key end

     0   :  { %s969_s24 = smov 0   ;;  %s1359_s0 = inlined_call_operand.vmem [shape: f32[2,4,256], index: 0, kind: input, shape index: {}]   ;;  %s1360_s1 = inlined_call_operand.vmem [shape: f32[9,1,256], index: 1, kind: input, shape index: {}]   ;;  %s1361_s2 = inlined_call_operand.vmem [shape: bf16[2,8,4], index: 2, kind: input, shape index: {}]   ;;  %s1362_s3 = inlined_call_operand.vmem [shape: bf16[2,8,72], index: 3, kind: input, shape index: {}]   ;;  %s1363_s4 = inlined_call_operand.vmem [shape: bf16[2,4,8], index: 4, kind: input, shape index: {}]   ;;  %s1364_s5 = inlined_call_operand.vmem [shape: f32[2,12,1], index: 5, kind: input, shape index: {}]   ;;  %s1365_s6 = inlined_call_operand.vmem [shape: f32[2,8,256], index: 6, kind: input, shape index: {}]   ;;  %s1366_s7 = inlined_call_operand.vmem [shape: f32[2,4,256], index: 7, kind: output, shape index: {}]  }
   0x1 LB: > { %s853_s25 = sadd.s32 4294967295, %s918_s24   ;;  %p857_p0 = scmp.ge.s32.totalorder %s918_s24, 1  ;;  %s918_s24 = sphi %s969_s24, %s17_s24  }
   0x2   : > { %p237_p1 = scmp.lt.s32.totalorder %s918_s24, 3 }
   0x4   : > { %p238_p2 = pnand %p857_p0, %p237_p1 }
   0x5   : > { %p269_p3 = scmp.lt.s32.totalorder (!%p238_p2), %s853_s25, 1  ;;  %s921_s11 = smov (!%p238_p2), 112  }
   0x6   : > { %241 = sbr.rel (%p238_p2) target bundleno = 1170 (0x492), region = 48  ;;  %s922_s12 = smov (!%p238_p2), 113  }
   0x7   : > { %s923_s13 = smov (!%p238_p2), 111   ;;  %s924_s14 = smov (!%p238_p2), 127  }
   0x8   : > { %s925_s15 = smov (!%p238_p2), 15   ;;  %s926_s16 = smov (!%p238_p2), 1  }
   0x9   : > { %s927_s17 = smov (!%p238_p2), 17   ;;  %s928_s18 = smov (!%p238_p2), 16  }
   0xb   : > { %v920_v0 = vmov 0   ;;  %v281_v1 = vld [vmem:[%s1364_s5] sm:$0xff]  ;;  %s1368_s25 = smov (!%p269_p3, %s853_s25), 1  ;;  %vm301_vm0 = vcmask 1041408   ;;  %vm297_vm1 = vcmask 31744   ;;  %v876_v17 = vld [vmem:[%s1364_s5 + $0x10] sm:$0xff]  ;;  %v338_v19 = vlaneseq }
   0xc   : > { %910 = vset.pattern.permute.xlu0 %v920_v0  ;;  %911 = vset.pattern.permute.xlu2 %v920_v0  ;;  %s891_s28 = sshll.u32 %s1368_s25, 3  ;;  %v283_v9 = vld [vmem:[%s1361_s2] sm:$0xf]  ;;  %v1037_v22 = vld [vmem:[%s1360_s1 + $0x10] sm:$0x3]  ;;  %vm489_vm3 = vcmask 1043456  }
   0xd   : > { %294 = vperm.xlu0 %910, %v281_v1   ;;  %s273_s8 = scalar_lea.vmem %s1359_s0, %s891_s28  ;;  %v1039_v23 = vand.u32 127, %v338_v19  ;;  %v466_v25 = vperm.slane %v1037_v22, 0  ;;  %v467_v26 = vperm.slane %v1037_v22, 1  ;;  %v1055_v33 = vld [vmem:[%s1360_s1 + $0xe] sm:$0x3]  ;;  %vm485_vm11 = vcmask 588800   ;;  %s278_s19 = scalar_lea.vmem %s1366_s7, %s891_s28 }
   0xe   : > { %v280_v2 = vld [vmem:[%s273_s8] sm:$0xff]  ;;  %v1060_v36 = vld [vmem:[%s1360_s1 + $0xc] sm:$0x3]  ;;  %v450_v37 = vperm.slane %v1055_v33, 0  ;;  %v451_v41 = vperm.slane %v1055_v33, 1  ;;  %vm532_vm12 = vcmask 64512  }
   0xf   : > { %285 = vst [vmem:[#allocation1] ss:$2 sm:$0xff] %v280_v2  ;;  %vm460_vm2 = vcmp.lt.s32.totalorder %v1039_v23, 111  ;;  %vm444_vm4 = vcmp.lt.s32.totalorder %v1039_v23, 112  ;;  %vm428_vm5 = vcmp.lt.s32.totalorder %v1039_v23, 113  ;;  %v434_v42 = vperm.slane %v1060_v36, 0 }
  0x10   : > { %v435_v43 = vperm.slane %v1060_v36, 1  ;;  %v1077_v48 = vld [vmem:[%s1360_s1 + $0x8] sm:$0x3]  ;;  %v1094_v55 = vld [vmem:[%s1360_s1 + $0xa] sm:$0x3]  ;;  %vm412_vm6 = vcmp.lt.s32.totalorder %v1039_v23, 127 }
  0x11   : > { %v403_v56 = vperm.slane %v1077_v48, 1  ;;  %v402_v59 = vperm.slane %v1077_v48, 0  ;;  %v1101_v60 = vld [vmem:[%s1360_s1 + $0x4] sm:$0x3]  ;;  %v418_v61 = vperm.slane %v1094_v55, 0  ;;  %v419_v62 = vperm.slane %v1094_v55, 1 }
  0x12   : > { %vm371_vm7 = vcmp.lt.s32.totalorder %v1039_v23, 15  ;;  %v1110_v63 = vld [vmem:[%s1360_s1 + $0x6] sm:$0x3]  ;;  %vm387_vm8 = vcmp.lt.s32.totalorder %v1039_v23, 1  ;;  %vm340_vm9 = vcmp.lt.s32.totalorder %v1039_v23, 17  ;;  %vm355_vm10 = vcmp.lt.s32.totalorder %v1039_v23, 16 }
  0x13   : > { %v881_v23 = vld [vmem:[%s1362_s3 + $0x4] sm:$0xf] }
  0x16   : > { %v286_v3 = vld.sshfl [vmem:[#allocation1] sm:$0xff pattern:$0x75316420]  ;;  %v287_v4 = vld.sshfl [vmem:[#allocation1 + $0x8] sm:$0xff pattern:$0x75316420] }
  0x17   : > { %v290_v5 = vpack.c.bf16 %v286_v3, %v286_v3  ;;  %v291_v6 = vpack.c.bf16 %v287_v4, %v287_v4  ;;  %568 = vst [vmem:[#allocation1] ss:$2 sm:$0xff] %v280_v2  ;;  %v377_v3 = vperm.slane %v1101_v60, 0  ;;  %v378_v4 = vperm.slane %v1101_v60, 1 }
  0x19   : > { %v303_v7 = vsel %vm301_vm0, %v290_v5, 0  ;;  %v306_v8 = vsel %vm301_vm0, %v291_v6, 0 }
  0x1a   : > { %315 = vmatpush.bf16.msra.mxu2 %v303_v7  ;;  %328 = vmatpush.bf16.msra.mxu1 %v306_v8 }
  0x1d   : > { %862 = vmatmul.msk.bf16.vlgmr.msra.gmra.mxu2 %vm297_vm1, %v283_v9  ;;  %863 = vmatmul.msk.bf16.vlgmr.msra.gmra.mxu1 %vm297_vm1, %v283_v9 }
  0x7f   : > { %v295_v10 = vpop.permute.xlu0 %294 }
  0x9a   : > { %v330_v11 = vpop.f32.mrf.mxu1 }
  0x9b   : > { %v995_v12 = vadd.f32 %v330_v11, %v295_v10  ;;  %v393_v11 = vperm.slane %v1110_v63, 0 }
  0x9d   : > { %442 = vrot.lane.b32.xlu0 %v995_v12, %s921_s11  ;;  %426 = vrot.lane.b32.xlu2 %v995_v12, %s922_s12  ;;  %v407_v1 = vmul.f32 %v403_v56, %v995_v12 }
  0x9e   : > { %458 = vrot.lane.b32.xlu1 %v995_v12, %s923_s13 }
  0xa0   : > { %v317_v13 = vpop.f32.mrf.mxu2 }
  0xa1   : > { %v1003_v15 = vadd.f32 %v317_v13, %v295_v10  ;;  %v394_v13 = vperm.slane %v1110_v63, 1 }
  0xa2   : > { %v332_v14 = vpop.f32.mrf.mxu1 }
  0xa3   : > { %v406_v5 = vmul.f32 %v402_v59, %v1003_v15 }
  0xa5   : > { %410 = vrot.lane.b32.xlu2 %v995_v12, %s924_s14  ;;  %456 = vrot.lane.b32.xlu0 %v1003_v15, %s923_s13 }
  0xa6   : > { %369 = vrot.lane.b32.xlu1 %v995_v12, %s925_s15 }
  0xa8   : > { %v319_v16 = vpop.f32.mrf.mxu2 }
  0xad   : > { %440 = vrot.lane.b32.xlu2 %v1003_v15, %s921_s11  ;;  %385 = vrot.lane.b32.xlu0 %v995_v12, %s926_s16 }
  0xae   : > { %424 = vrot.lane.b32.xlu1 %v1003_v15, %s922_s12 }
  0xb5   : > { %383 = vrot.lane.b32.xlu2 %v1003_v15, %s926_s16  ;;  %367 = vrot.lane.b32.xlu0 %v1003_v15, %s925_s15 }
  0xb6   : > { %408 = vrot.lane.b32.xlu1 %v1003_v15, %s924_s14 }
  0xbd   : > { %336 = vrot.lane.b32.xlu2 %v995_v12, %s927_s17  ;;  %351 = vrot.lane.b32.xlu0 %v1003_v15, %s928_s18 }
  0xbe   : > { %334 = vrot.lane.b32.xlu1 %v1003_v15, %s927_s17 }
  0xc5   : > { %590 = vperm.xlu0 %910, %v876_v17  }
  0xc6   : > { %353 = vrot.lane.b32.xlu1 %v995_v12, %s928_s18 }
  0xf7   : > { %v427_v18 = vpop.permute.xlu2 %426 }
  0xff   : > { %v411_v24 = vpop.permute.xlu2 %410 }
 0x107   : > { %v441_v40 = vpop.permute.xlu2 %440 }
 0x10f   : > { %v443_v20 = vpop.permute.xlu0 %442  ;;  %v384_v10 = vpop.permute.xlu2 %383 }
 0x110   : > { %v459_v21 = vpop.permute.xlu1 %458  ;;  %v445_v44 = vsel %vm444_vm4, %v441_v40, %v443_v20  ;;  %v446_v45 = vsel %vm444_vm4, %v443_v20, %v441_v40 }
 0x111   : > { %v454_v51 = vmul.f32 %v450_v37, %v445_v44  ;;  %v455_v52 = vmul.f32 %v451_v41, %v446_v45 }
 0x117   : > { %v457_v27 = vpop.permute.xlu0 %456 }
 0x118   : > { %v370_v28 = vpop.permute.xlu1 %369  ;;  %v461_v29 = vsel %vm460_vm2, %v457_v27, %v459_v21  ;;  %v462_v30 = vsel %vm460_vm2, %v459_v21, %v457_v27 }
 0x119   : > { %v470_v31 = vmul.f32 %v466_v25, %v461_v29  ;;  %v471_v32 = vmul.f32 %v467_v26, %v462_v30 }
 0x11b   : > { %v480_v34 = vpack.c.bf16 %v470_v31, %v470_v31  ;;  %v481_v35 = vpack.c.bf16 %v471_v32, %v471_v32  ;;  %v1150_v32 = vld [vmem:[%s1360_s1] sm:$0x3] }
 0x11d   : > { %v491_v38 = vsel %vm489_vm3, %v480_v34, 0  ;;  %v494_v39 = vsel %vm489_vm3, %v481_v35, 0  ;;  %v1155_v34 = vld [vmem:[%s1360_s1 + $0x2] sm:$0x3]  ;;  %v345_v35 = vperm.slane %v1150_v32, 0 }
 0x11e   : > { %499 = vmatpush.bf16.msrb.mxu2 %v491_v38  ;;  %512 = vmatpush.bf16.msra.mxu3 %v494_v39  ;;  %v337_v38 = vpop.permute.xlu2 %336  ;;  %v346_v39 = vperm.slane %v1150_v32, 1  ;;  %v361_v40 = vperm.slane %v1155_v34, 0  ;;  %v362_v44 = vperm.slane %v1155_v34, 1  ;;  %v882_v32 = vld [vmem:[%s1365_s6 + $0x10] sm:$0xff]  ;;  %v883_v34 = vld [vmem:[%s1365_s6 + $0x18] sm:$0xff] }
 0x11f   : > { %v386_v46 = vpop.permute.xlu0 %385 }
 0x120   : > { %v425_v47 = vpop.permute.xlu1 %424  ;;  %v388_v17 = vsel %vm387_vm8, %v384_v10, %v386_v46 }
 0x121   : > { %v429_v49 = vsel %vm428_vm5, %v425_v47, %v427_v18  ;;  %v430_v50 = vsel %vm428_vm5, %v427_v18, %v425_v47  ;;  %v389_v18 = vsel %vm387_vm8, %v386_v46, %v384_v10 }
 0x122   : > { %v438_v53 = vmul.f32 %v434_v42, %v429_v49  ;;  %v439_v54 = vmul.f32 %v435_v43, %v430_v50  ;;  %v397_v27 = vmul.f32 %v393_v11, %v389_v18 }
 0x124   : > { %v478_v57 = vpack.c.bf16 %v454_v51, %v438_v53  ;;  %v479_v58 = vpack.c.bf16 %v455_v52, %v439_v54 }
 0x126   : > { %500 = vmatpush.bf16.msrb.mxu2 %v478_v57  ;;  %513 = vmatpush.bf16.msra.mxu3 %v479_v58 }
 0x127   : > { %v368_v0 = vpop.permute.xlu0 %367 }
 0x128   : > { %v409_v2 = vpop.permute.xlu1 %408  ;;  %v372_v8 = vsel %vm371_vm7, %v368_v0, %v370_v28  ;;  %v373_v9 = vsel %vm371_vm7, %v370_v28, %v368_v0  ;;  %v398_v28 = vmul.f32 %v394_v13, %v388_v17 }
 0x129   : > { %v413_v6 = vsel %vm412_vm6, %v409_v2, %v411_v24  ;;  %v414_v7 = vsel %vm412_vm6, %v411_v24, %v409_v2  ;;  %v381_v19 = vmul.f32 %v377_v3, %v373_v9  ;;  %v382_v20 = vmul.f32 %v378_v4, %v372_v8  ;;  %v282_v2 = vld [vmem:[%s1364_s5 + $0x8] sm:$0xf] }
 0x12a   : > { %v422_v14 = vmul.f32 %v418_v61, %v413_v6  ;;  %v423_v16 = vmul.f32 %v419_v62, %v414_v7  ;;  %529 = vperm.xlu2 %911, %v282_v2   ;;  %v484_v6 = vld [vmem:[%s1365_s6 + $0x8] sm:$0xff] }
 0x12b   : > { %v474_v30 = vpack.c.bf16 %v397_v27, %v381_v19  ;;  %v475_v31 = vpack.c.bf16 %v398_v28, %v382_v20  ;;  %v524_v27 = vld [vmem:[%s1363_s4] sm:$0x3] }
 0x12c   : > { %v476_v21 = vpack.c.bf16 %v422_v14, %v406_v5  ;;  %v477_v24 = vpack.c.bf16 %v423_v16, %v407_v1  ;;  %v482_v1 = vld [vmem:[%s1362_s3] sm:$0xf] }
 0x12d   : > { %v483_v5 = vld [vmem:[%s1365_s6] sm:$0xff] }
 0x12e   : > { %501 = vmatpush.bf16.msrb.mxu2 %v476_v21  ;;  %514 = vmatpush.bf16.msra.mxu3 %v477_v24  ;;  %v569_v28 = vld.sshfl [vmem:[#allocation1] sm:$0xff pattern:$0x75316420] }
 0x12f   : > { %v352_v47 = vpop.permute.xlu0 %351 }
 0x130   : > { %v335_v29 = vpop.permute.xlu1 %334 }
 0x131   : > { %v341_v45 = vsel %vm340_vm9, %v335_v29, %v337_v38  ;;  %v342_v46 = vsel %vm340_vm9, %v337_v38, %v335_v29 }
 0x132   : > { %502 = vmatpush.bf16.msrb.mxu2 %v474_v30  ;;  %515 = vmatpush.bf16.msra.mxu3 %v475_v31  ;;  %v349_v52 = vmul.f32 %v345_v35, %v342_v46  ;;  %v350_v53 = vmul.f32 %v346_v39, %v341_v45  ;;  %v570_v30 = vld.sshfl [vmem:[#allocation1 + $0x8] sm:$0xff pattern:$0x75316420] }
 0x137   : > { %v591_v2 = vpop.permute.xlu0 %590 }
 0x138   : > { %v354_v49 = vpop.permute.xlu1 %353 }
 0x139   : > { %v356_v50 = vsel %vm355_vm10, %v352_v47, %v354_v49  ;;  %v357_v51 = vsel %vm355_vm10, %v354_v49, %v352_v47 }
 0x13a   : > { %v365_v54 = vmul.f32 %v361_v40, %v357_v51  ;;  %v366_v57 = vmul.f32 %v362_v44, %v356_v50 }
 0x13c   : > { %v472_v58 = vpack.c.bf16 %v365_v54, %v349_v52  ;;  %v473_v0 = vpack.c.bf16 %v366_v57, %v350_v53 }
 0x13e   : > { %503 = vmatpush.bf16.msrb.mxu2 %v472_v58  ;;  %516 = vmatpush.bf16.msra.mxu3 %v473_v0 }
 0x141   : > { %872 = vmatmul.msk.bf16.vlgmr.msrb.gmra.mxu2 %vm485_vm11, %v482_v1  ;;  %873 = vmatmul.msk.bf16.vlgmr.msra.gmra.mxu3 %vm485_vm11, %v482_v1  ;;  %v878_v1 = vld [vmem:[%s1361_s2 + $0x4] sm:$0xf] }
 0x1c4   : > { %v505_v7 = vpop.f32.mrf.mxu2  ;;  %v518_v8 = vpop.f32.mrf.mxu3 }
 0x1c5   : > { %v506_v9 = vadd.f32 %v505_v7, %v483_v5  ;;  %v519_v10 = vadd.f32 %v518_v8, %v484_v6 }
 0x1c7   : > { %v523_v14 = vadd.f32 %v519_v10, %v995_v12  ;;  %v522_v16 = vadd.f32 %v506_v9, %v1003_v15  ;;  %v530_v12 = vpop.permute.xlu2 %529 }
 0x1c9   : > { %v525_v17 = vpack.c.bf16 %v522_v16, %v522_v16  ;;  %v526_v18 = vpack.c.bf16 %v523_v14, %v523_v14  ;;  %v877_v14 = vld [vmem:[%s1364_s5 + $0x18] sm:$0xf] }
 0x1cb   : > { %v537_v19 = vsel %vm489_vm3, %v525_v17, 0  ;;  %v540_v20 = vsel %vm489_vm3, %v526_v18, 0 }
 0x1cc   : > { %v507_v21 = vpop.f32.mrf.mxu2  ;;  %v520_v24 = vpop.f32.mrf.mxu3  ;;  %549 = vmatpush.bf16.msra.mxu0 %v537_v19  ;;  %562 = vmatpush.bf16.msrb.mxu1 %v540_v20 }
 0x1cf   : > { %874 = vmatmul.msk.bf16.vlgmr.msra.gmra.mxu0 %vm532_vm12, %v524_v27  ;;  %875 = vmatmul.msk.bf16.vlgmr.msrb.gmra.mxu1 %vm532_vm12, %v524_v27 }
 0x24c   : > { %v551_v15 = vpop.f32.mrf.mxu0  ;;  %v564_v29 = vpop.f32.mrf.mxu1 }
 0x24d   : > { %v552_v31 = vadd.f32 %v551_v15, %v530_v12  ;;  %v565_v38 = vadd.f32 %v564_v29, %v530_v12 }
 0x24f   : > { %v573_v45 = vadd.f32 %v569_v28, %v552_v31  ;;  %v574_v46 = vadd.f32 %v570_v30, %v565_v38 }
 0x251   : > { %v577_v47 = vmul.f32 0.1, %v573_v45  ;;  %vm576_vm13 = vcmp.gt.f32.partialorder %v574_v46, 0.0  ;;  %v578_v49 = vmul.f32 0.1, %v574_v46  ;;  %vm575_vm14 = vcmp.gt.f32.partialorder %v573_v45, 0.0 }
 0x253   : > { %v1202_v50 = vsel %vm575_vm14, %v573_v45, %v577_v47  ;;  %v1204_v51 = vsel %vm576_vm13, %v574_v46, %v578_v49 }
 0x254   : > { %v553_v52 = vpop.f32.mrf.mxu0  ;;  %v566_v53 = vpop.f32.mrf.mxu1  ;;  %v586_v54 = vpack.c.bf16 %v1202_v50, %v1202_v50  ;;  %v587_v57 = vpack.c.bf16 %v1204_v51, %v1204_v51 }
 0x256   : > { %v597_v58 = vsel %vm301_vm0, %v586_v54, 0  ;;  %v600_v0 = vsel %vm301_vm0, %v587_v57, 0 }
 0x257   : > { %609 = vmatpush.bf16.msrb.mxu0 %v597_v58  ;;  %622 = vmatpush.bf16.msra.mxu1 %v600_v0 }
 0x25a   : > { %879 = vmatmul.msk.bf16.vlgmr.msrb.gmra.mxu0 %vm297_vm1, %v878_v1  ;;  %880 = vmatmul.msk.bf16.vlgmr.msra.gmra.mxu1 %vm297_vm1, %v878_v1 }
 0x2d7   : > { %v611_v5 = vpop.f32.mrf.mxu0  ;;  %v624_v6 = vpop.f32.mrf.mxu1 }
 0x2d8   : > { %v1217_v7 = vadd.f32 %v611_v5, %v591_v2  ;;  %v1219_v8 = vadd.f32 %v624_v6, %v591_v2 }
 0x2da   : > { %688 = vrot.lane.b32.xlu2 %v1219_v8, %s923_s13  ;;  %670 = vrot.lane.b32.xlu0 %v1217_v7, %s922_s12 }
 0x2db   : > { %686 = vrot.lane.b32.xlu1 %v1217_v7, %s923_s13 }
 0x2df   : > { %v613_v9 = vpop.f32.mrf.mxu0  ;;  %v626_v10 = vpop.f32.mrf.mxu1 }
 0x2e2   : > { %678 = vrot.lane.b32.xlu2 %v1217_v7, %s921_s11  ;;  %680 = vrot.lane.b32.xlu0 %v1219_v8, %s921_s11 }
 0x2e3   : > { %672 = vrot.lane.b32.xlu1 %v1219_v8, %s922_s12 }
 0x2ea   : > { %664 = vrot.lane.b32.xlu2 %v1219_v8, %s924_s14  ;;  %644 = vrot.lane.b32.xlu0 %v1217_v7, %s925_s15 }
 0x2eb   : > { %662 = vrot.lane.b32.xlu1 %v1217_v7, %s924_s14 }
 0x2f2   : > { %652 = vrot.lane.b32.xlu2 %v1217_v7, %s926_s16  ;;  %654 = vrot.lane.b32.xlu0 %v1219_v8, %s926_s16 }
 0x2f3   : > { %646 = vrot.lane.b32.xlu1 %v1219_v8, %s925_s15 }
 0x2fa   : > { %630 = vrot.lane.b32.xlu2 %v1219_v8, %s927_s17  ;;  %636 = vrot.lane.b32.xlu0 %v1217_v7, %s928_s18 }
 0x2fb   : > { %628 = vrot.lane.b32.xlu1 %v1217_v7, %s927_s17 }
 0x302   : > { %752 = vperm.xlu2 %911, %v877_v14  }
 0x303   : > { %638 = vrot.lane.b32.xlu1 %v1219_v8, %s928_s18 }
 0x334   : > { %v689_v16 = vpop.permute.xlu2 %688 }
 0x33c   : > { %v679_v27 = vpop.permute.xlu2 %678 }
 0x344   : > { %v665_v54 = vpop.permute.xlu2 %664 }
 0x34c   : > { %v671_v17 = vpop.permute.xlu0 %670  ;;  %v653_v2 = vpop.permute.xlu2 %652 }
 0x34d   : > { %v687_v18 = vpop.permute.xlu1 %686 }
 0x34e   : > { %v690_v19 = vsel %vm460_vm2, %v687_v18, %v689_v16  ;;  %v691_v20 = vsel %vm460_vm2, %v689_v16, %v687_v18 }
 0x34f   : > { %v692_v21 = vmul.f32 %v690_v19, %v466_v25  ;;  %v693_v24 = vmul.f32 %v691_v20, %v467_v26 }
 0x351   : > { %v702_v12 = vpack.c.bf16 %v692_v21, %v692_v21  ;;  %v703_v15 = vpack.c.bf16 %v693_v24, %v693_v24 }
 0x353   : > { %v713_v28 = vsel %vm489_vm3, %v702_v12, 0  ;;  %v716_v29 = vsel %vm489_vm3, %v703_v15, 0 }
 0x354   : > { %721 = vmatpush.bf16.msra.mxu2 %v713_v28  ;;  %734 = vmatpush.bf16.msrb.mxu3 %v716_v29  ;;  %v681_v30 = vpop.permute.xlu0 %680 }
 0x355   : > { %v682_v31 = vsel %vm444_vm4, %v679_v27, %v681_v30  ;;  %v683_v38 = vsel %vm444_vm4, %v681_v30, %v679_v27  ;;  %v673_v25 = vpop.permute.xlu1 %672 }
 0x356   : > { %v684_v22 = vmul.f32 %v682_v31, %v450_v37  ;;  %v685_v26 = vmul.f32 %v683_v38, %v451_v41  ;;  %v674_v45 = vsel %vm428_vm5, %v671_v17, %v673_v25  ;;  %v675_v46 = vsel %vm428_vm5, %v673_v25, %v671_v17  ;;  %v631_v17 = vpop.permute.xlu2 %630 }
 0x357   : > { %v676_v47 = vmul.f32 %v674_v45, %v434_v42  ;;  %v677_v49 = vmul.f32 %v675_v46, %v435_v43  ;;  %v660_v42 = vmul.f32 %v1217_v7, %v402_v59  ;;  %v661_v43 = vmul.f32 %v1219_v8, %v403_v56 }
 0x359   : > { %v700_v52 = vpack.c.bf16 %v684_v22, %v676_v47  ;;  %v701_v53 = vpack.c.bf16 %v685_v26, %v677_v49  ;;  %v886_v26 = vld [vmem:[%s1363_s4 + $0x2] sm:$0x3] }
 0x35b   : > { %722 = vmatpush.bf16.msra.mxu2 %v700_v52  ;;  %735 = vmatpush.bf16.msrb.mxu3 %v701_v53 }
 0x35c   : > { %v645_v37 = vpop.permute.xlu0 %644 }
 0x35d   : > { %v663_v33 = vpop.permute.xlu1 %662 }
 0x35e   : > { %v666_v41 = vsel %vm412_vm6, %v663_v33, %v665_v54  ;;  %v667_v57 = vsel %vm412_vm6, %v665_v54, %v663_v33 }
 0x35f   : > { %v668_v58 = vmul.f32 %v666_v41, %v418_v61  ;;  %v669_v36 = vmul.f32 %v667_v57, %v419_v62 }
 0x361   : > { %v698_v0 = vpack.c.bf16 %v668_v58, %v660_v42  ;;  %v699_v1 = vpack.c.bf16 %v669_v36, %v661_v43 }
 0x363   : > { %723 = vmatpush.bf16.msra.mxu2 %v698_v0  ;;  %736 = vmatpush.bf16.msrb.mxu3 %v699_v1 }
 0x364   : > { %v655_v5 = vpop.permute.xlu0 %654 }
 0x365   : > { %v656_v61 = vsel %vm387_vm8, %v653_v2, %v655_v5  ;;  %v657_v55 = vsel %vm387_vm8, %v655_v5, %v653_v2  ;;  %v647_v62 = vpop.permute.xlu1 %646 }
 0x366   : > { %v658_v59 = vmul.f32 %v657_v55, %v393_v11  ;;  %v659_v48 = vmul.f32 %v656_v61, %v394_v13  ;;  %v648_v56 = vsel %vm371_vm7, %v645_v37, %v647_v62  ;;  %v649_v6 = vsel %vm371_vm7, %v647_v62, %v645_v37 }
 0x367   : > { %v650_v9 = vmul.f32 %v649_v6, %v377_v3  ;;  %v651_v10 = vmul.f32 %v648_v56, %v378_v4 }
 0x369   : > { %v696_v14 = vpack.c.bf16 %v658_v59, %v650_v9  ;;  %v697_v16 = vpack.c.bf16 %v659_v48, %v651_v10 }
 0x36b   : > { %724 = vmatpush.bf16.msra.mxu2 %v696_v14  ;;  %737 = vmatpush.bf16.msrb.mxu3 %v697_v16 }
 0x36c   : > { %v637_v18 = vpop.permute.xlu0 %636 }
 0x36d   : > { %v629_v11 = vpop.permute.xlu1 %628 }
 0x36e   : > { %v632_v63 = vsel %vm340_vm9, %v629_v11, %v631_v17  ;;  %v633_v13 = vsel %vm340_vm9, %v631_v17, %v629_v11 }
 0x36f   : > { %v634_v4 = vmul.f32 %v633_v13, %v345_v35  ;;  %v635_v20 = vmul.f32 %v632_v63, %v346_v39 }
 0x375   : > { %v639_v19 = vpop.permute.xlu1 %638 }
 0x376   : > { %v640_v3 = vsel %vm355_vm10, %v637_v18, %v639_v19  ;;  %v641_v60 = vsel %vm355_vm10, %v639_v19, %v637_v18 }
 0x377   : > { %v642_v21 = vmul.f32 %v641_v60, %v361_v40  ;;  %v643_v24 = vmul.f32 %v640_v3, %v362_v44 }
 0x379   : > { %v694_v27 = vpack.c.bf16 %v642_v21, %v634_v4  ;;  %v695_v12 = vpack.c.bf16 %v643_v24, %v635_v20 }
 0x37b   : > { %725 = vmatpush.bf16.msra.mxu2 %v694_v27  ;;  %738 = vmatpush.bf16.msrb.mxu3 %v695_v12 }
 0x37e   : > { %884 = vmatmul.msk.bf16.vlgmr.msra.gmra.mxu2 %vm485_vm11, %v881_v23  ;;  %885 = vmatmul.msk.bf16.vlgmr.msrb.gmra.mxu3 %vm485_vm11, %v881_v23 }
 0x401   : > { %v727_v35 = vpop.f32.mrf.mxu2  ;;  %v740_v39 = vpop.f32.mrf.mxu3 }
 0x402   : > { %v728_v40 = vadd.f32 %v882_v32, %v727_v35  ;;  %v741_v44 = vadd.f32 %v883_v34, %v740_v39 }
 0x404   : > { %v744_v15 = vadd.f32 %v728_v40, %v1217_v7  ;;  %v745_v28 = vadd.f32 %v741_v44, %v1219_v8  ;;  %v753_v7 = vpop.permute.xlu2 %752 }
 0x406   : > { %v748_v29 = vpack.c.bf16 %v744_v15, %v744_v15  ;;  %v749_v30 = vpack.c.bf16 %v745_v28, %v745_v28 }
 0x408   : > { %v759_v31 = vsel %vm489_vm3, %v748_v29, 0  ;;  %v762_v38 = vsel %vm489_vm3, %v749_v30, 0 }
 0x409   : > { %v729_v25 = vpop.f32.mrf.mxu2  ;;  %v742_v22 = vpop.f32.mrf.mxu3  ;;  %771 = vmatpush.bf16.msra.mxu0 %v759_v31  ;;  %784 = vmatpush.bf16.msrb.mxu1 %v762_v38 }
 0x40c   : > { %887 = vmatmul.msk.bf16.vlgmr.msra.gmra.mxu0 %vm532_vm12, %v886_v26  ;;  %888 = vmatmul.msk.bf16.vlgmr.msrb.gmra.mxu1 %vm532_vm12, %v886_v26 }
 0x489   : > { %v773_v8 = vpop.f32.mrf.mxu0  ;;  %v786_v45 = vpop.f32.mrf.mxu1 }
 0x48a   : > { %v774_v46 = vadd.f32 %v773_v8, %v753_v7  ;;  %v787_v47 = vadd.f32 %v786_v45, %v753_v7 }
 0x48c   : > { %v791_v49 = vadd.f32 %v787_v47, %v1204_v51  ;;  %v790_v52 = vadd.f32 %v774_v46, %v1202_v50 }
 0x48e   : > { %v794_v53 = vrot.slane %v791_v49, 4 }
 0x490   : > { %v795_v54 = vsel %vm489_vm3, %v790_v52, %v794_v53 }
 0x491   : > { %797 = vst [vmem:[%s278_s19] sm:$0xff] %v795_v54  ;;  %v775_v37 = vpop.f32.mrf.mxu0  ;;  %v788_v33 = vpop.f32.mrf.mxu1 }
 0x492 PF: > { %s17_s24 = sadd.s32 1, %s918_s24  }
 0x493   : > { %p14_p4 = scmp.ge.s32.totalorder %s17_s24, 4  }
 0x495   :  { %16 = sbr.rel (!%p14_p4) target bundleno = 1 (0x1), region = 91 }

</bundles_post_ra>
